<compile_context>
chip_gen: v7x
topology: tpu7x:2x2x1
jax: 0.10.0
libtpu: 0.0.40
codegen_flags: <defaults>
</compile_context>

<pallas_src>
import jax
import jax.numpy as jnp
from jax import lax
from jax.experimental import pallas as pl
from jax.experimental.pallas import tpu as pltpu


def _round_up(x, m):
    return ((x + m - 1) // m) * m


def _proj_kernel(x_ref, w_ref, b_ref, o_ref, acc_ref):
    # tiled (tokens x C) @ (C x E) + bias, f32 accumulation in VMEM scratch
    @pl.when(pl.program_id(2) == 0)
    def _():
        acc_ref[...] = jnp.zeros_like(acc_ref)

    acc_ref[...] += jnp.dot(
        x_ref[...], w_ref[...], preferred_element_type=jnp.float32
    )

    @pl.when(pl.program_id(2) == pl.num_programs(2) - 1)
    def _():
        o_ref[...] = (acc_ref[...] + b_ref[...]).astype(o_ref.dtype)


def hybrid_embed_proj_pallas(feat, proj_w, proj_b, *, tm=256, tn=256, tk=512,
                             compute_dtype=jnp.bfloat16):
    """Equivalent of `self.proj(feat).flatten(2).transpose(1, 2)`.

    feat:   (B, C, Hf, Wf) backbone feature map (NCHW)
    proj_w: (E, C) or (E, C, 1, 1)  -- nn.Conv2d(feature_dim, embed_dim, 1).weight
    proj_b: (E,)                    -- conv bias
    returns (B, Hf*Wf, E)
    """
    B, C, Hf, Wf = feat.shape
    E = proj_w.shape[0]
    out_dtype = feat.dtype

    # tokens-last-feature layout: feature dim on the lane axis
    x2d = jnp.transpose(feat, (0, 2, 3, 1)).reshape(B * Hf * Wf, C)    # (M, C)
    wk = jnp.transpose(proj_w.reshape(E, C), (1, 0))                   # (C, E)
    M = B * Hf * Wf

    # clamp tiles for small problems, keep lane-dense (128-multiple) K/N dims
    tk = min(tk, _round_up(C, 128))
    tn = min(tn, _round_up(E, 128))
    tm = min(tm, _round_up(M, 16))     # bf16 sublane pack = 16
    Cp = _round_up(C, tk)
    Ep = _round_up(E, tn)
    Mp = _round_up(M, tm)

    x_p = jnp.zeros((Mp, Cp), compute_dtype).at[:M, :C].set(x2d.astype(compute_dtype))
    w_p = jnp.zeros((Cp, Ep), compute_dtype).at[:C, :E].set(wk.astype(compute_dtype))
    b_p = jnp.zeros((1, Ep), jnp.float32).at[0, :E].set(proj_b.astype(jnp.float32))

    out = pl.pallas_call(
        _proj_kernel,
        out_shape=jax.ShapeDtypeStruct((Mp, Ep), out_dtype),
        grid_spec=pltpu.PrefetchScalarGridSpec(
            num_scalar_prefetch=0,
            grid=(Mp // tm, Ep // tn, Cp // tk),
            in_specs=[
                pl.BlockSpec((tm, tk), lambda i, j, k: (i, k)),   # tokens tile
                pl.BlockSpec((tk, tn), lambda i, j, k: (k, j)),   # weight tile
                pl.BlockSpec((1, tn), lambda i, j, k: (0, j)),    # bias tile
            ],
            out_specs=pl.BlockSpec((tm, tn), lambda i, j, k: (i, j)),
            scratch_shapes=[pltpu.VMEM((tm, tn), jnp.float32)],
        ),
        compiler_params=pltpu.CompilerParams(
            dimension_semantics=("parallel", "parallel", "arbitrary"),
        ),
    )(x_p, w_p, b_p)

    return out[:M, :E].reshape(B, Hf * Wf, E)


def hybrid_embed_forward(x, backbone_fn, proj_w, proj_b, **kw):
    """Full HybridEmbed.forward: backbone -> (take last) -> Pallas 1x1-proj."""
    # TODO(synk): the backbone is an arbitrary CNN (e.g. a full ResNet) with no
    # single clean Pallas equivalent; it runs as plain JAX here.
    feat = backbone_fn(x)
    if isinstance(feat, (list, tuple)):
        feat = feat[-1]
    return hybrid_embed_proj_pallas(feat, proj_w, proj_b, **kw)


def _reference(feat, proj_w, proj_b):
    # proj(x).flatten(2).transpose(1, 2) in plain f32 JAX
    E = proj_w.shape[0]
    C = feat.shape[1]
    w2 = proj_w.reshape(E, C).astype(jnp.float32)
    y = jnp.einsum("bchw,ec->bhwe", feat.astype(jnp.float32), w2)
    y = y + proj_b.astype(jnp.float32)
    B, Hf, Wf, _ = y.shape
    return y.reshape(B, Hf * Wf, E)


if __name__ == "__main__":
    # Small shapes consistent with the module: batch=2, in_chans=3, img=16x16,
    # backbone produces a 4x4 feature map with feature_dim=32, embed_dim=64.
    B, in_chans, img = 2, 3, 16
    feature_dim, embed_dim = 32, 64

    key = jax.random.PRNGKey(0)
    kx, kcw, kpw, kpb = jax.random.split(key, 4)

    x = jax.random.normal(kx, (B, in_chans, img, img), dtype=jnp.float32)

    # Stand-in backbone: stride-4 3x3 conv + ReLU (mimics a CNN stem).
    conv_w = jax.random.normal(kcw, (feature_dim, in_chans, 3, 3), jnp.float32) * 0.05

    def backbone_fn(inp):
        y = lax.conv_general_dilated(
            inp, conv_w, window_strides=(4, 4), padding="SAME",
            dimension_numbers=("NCHW", "OIHW", "NCHW"))
        return jax.nn.relu(y)

    # PyTorch Conv2d(feature_dim, embed_dim, 1) parameters: (E, C, 1, 1) weight + (E,) bias.
    proj_w = jax.random.normal(kpw, (embed_dim, feature_dim, 1, 1), jnp.float32) * 0.02
    proj_b = jax.random.normal(kpb, (embed_dim,), jnp.float32) * 0.02

    feat = backbone_fn(x)
    ref = _reference(feat, proj_w, proj_b)

    # f32 compute path: tight numerical check
    out_f32 = hybrid_embed_forward(x, backbone_fn, proj_w, proj_b,
                                   compute_dtype=jnp.float32)
    out_f32 = jax.block_until_ready(out_f32)
    assert out_f32.shape == (B, (img // 4) * (img // 4), embed_dim)
    assert jnp.allclose(out_f32, ref, atol=1e-5, rtol=1e-5), "f32 mismatch vs reference"

    # bf16 matmul inputs (default), f32 accumulation: loose check
    out_bf16 = hybrid_embed_forward(x, backbone_fn, proj_w, proj_b)
    out_bf16 = jax.block_until_ready(out_bf16)
    assert out_bf16.shape == ref.shape
    assert jnp.allclose(out_bf16, ref, atol=1e-2, rtol=2e-2), "bf16 mismatch vs reference"

    print("KERNEL_OK")
</pallas_src>

<mosaic_0001>
module attributes {stable_mosaic.version = 11 : i64} {
  func.func @_proj_kernel(%arg0: i32, %arg1: i32, %arg2: i32, %arg3: memref<32x128xf32, #tpu.memory_space<vmem>>, %arg4: memref<128x128xf32, #tpu.memory_space<vmem>>, %arg5: memref<1x128xf32, #tpu.memory_space<vmem>>, %arg6: memref<32x128xf32, #tpu.memory_space<vmem>>, %arg7: memref<32x128xf32, #tpu.memory_space<vmem>>) attributes {dimension_semantics = [#tpu.dimension_semantics<parallel>, #tpu.dimension_semantics<parallel>, #tpu.dimension_semantics<arbitrary>], iteration_bounds = array<i64: 1, 1, 1>, scalar_prefetch = 0 : i64, scratch_operands = 1 : i64, tpu.core_type = #tpu.core_type<tc>, window_params = [{transform_indices = @transform_0, window_bounds = array<i64: 32, 128>}, {transform_indices = @transform_1, window_bounds = array<i64: 128, 128>}, {transform_indices = @transform_2, window_bounds = array<i64: 1, 128>}, {transform_indices = @transform_3, window_bounds = array<i64: 32, 128>}]} {
    %c0_i32 = arith.constant 0 : i32
    %0 = arith.cmpi eq, %arg2, %c0_i32 : i32
    %1 = arith.extui %0 : i1 to i32
    %c0_i32_0 = arith.constant 0 : i32
    %2 = arith.cmpi ne, %1, %c0_i32_0 : i32
    scf.if %2 {
      %cst_10 = arith.constant 0.000000e+00 : f32
      %12 = vector.broadcast %cst_10 : f32 to vector<32x128xf32>
      %c0_11 = arith.constant 0 : index
      %c0_12 = arith.constant 0 : index
      %13 = vector.load %arg7[%c0_11, %c0_12] : memref<32x128xf32, #tpu.memory_space<vmem>>, vector<32x128xf32>
      tpu.vector_store %arg7[%c0_11, %c0_12], %12 {strides = array<i32>} : memref<32x128xf32, #tpu.memory_space<vmem>>, vector<32x128xf32>,
    } else {
    }
    %c0 = arith.constant 0 : index
    %c0_1 = arith.constant 0 : index
    %3 = vector.load %arg7[%c0, %c0_1] : memref<32x128xf32, #tpu.memory_space<vmem>>, vector<32x128xf32>
    %c0_2 = arith.constant 0 : index
    %c0_3 = arith.constant 0 : index
    %4 = vector.load %arg3[%c0_2, %c0_3] : memref<32x128xf32, #tpu.memory_space<vmem>>, vector<32x128xf32>
    %c0_4 = arith.constant 0 : index
    %c0_5 = arith.constant 0 : index
    %5 = vector.load %arg4[%c0_4, %c0_5] : memref<128x128xf32, #tpu.memory_space<vmem>>, vector<128x128xf32>
    %cst = arith.constant dense<0.000000e+00> : vector<32x128xf32>
    %6 = tpu.matmul %4, %5, %cst {dimension_numbers = #tpu.dot_dimension_numbers<[1], [0], [0], [1], [0, 0, 1, 1], [], []>} : vector<32x128xf32>, vector<128x128xf32>, vector<32x128xf32> -> vector<32x128xf32>
    %7 = arith.addf %3, %6 : vector<32x128xf32>
    %c0_6 = arith.constant 0 : index
    %c0_7 = arith.constant 0 : index
    %8 = vector.load %arg7[%c0_6, %c0_7] : memref<32x128xf32, #tpu.memory_space<vmem>>, vector<32x128xf32>
    tpu.vector_store %arg7[%c0_6, %c0_7], %7 {strides = array<i32>} : memref<32x128xf32, #tpu.memory_space<vmem>>, vector<32x128xf32>,
    %c0_i32_8 = arith.constant 0 : i32
    %9 = arith.cmpi eq, %arg2, %c0_i32_8 : i32
    %10 = arith.extui %9 : i1 to i32
    %c0_i32_9 = arith.constant 0 : i32
    %11 = arith.cmpi ne, %10, %c0_i32_9 : i32
    scf.if %11 {
      %c0_10 = arith.constant 0 : index
      %c0_11 = arith.constant 0 : index
      %12 = vector.load %arg7[%c0_10, %c0_11] : memref<32x128xf32, #tpu.memory_space<vmem>>, vector<32x128xf32>
      %c0_12 = arith.constant 0 : index
      %c0_13 = arith.constant 0 : index
      %13 = vector.load %arg5[%c0_12, %c0_13] : memref<1x128xf32, #tpu.memory_space<vmem>>, vector<1x128xf32>
      %14 = vector.broadcast %13 : vector<1x128xf32> to vector<32x128xf32>
      %15 = arith.addf %12, %14 : vector<32x128xf32>
      %c0_14 = arith.constant 0 : index
      %c0_15 = arith.constant 0 : index
      %16 = vector.load %arg6[%c0_14, %c0_15] : memref<32x128xf32, #tpu.memory_space<vmem>>, vector<32x128xf32>
      tpu.vector_store %arg6[%c0_14, %c0_15], %15 {strides = array<i32>} : memref<32x128xf32, #tpu.memory_space<vmem>>, vector<32x128xf32>,
    } else {
    }
    return
  }
  func.func @transform_0(%arg0: i32, %arg1: i32, %arg2: i32) -> (i32, i32) {
    %c0_i32 = arith.constant 0 : i32
    return %arg0, %arg2 : i32, i32
  }
  func.func @transform_1(%arg0: i32, %arg1: i32, %arg2: i32) -> (i32, i32) {
    %c0_i32 = arith.constant 0 : i32
    return %arg2, %arg1 : i32, i32
  }
  func.func @transform_2(%arg0: i32, %arg1: i32, %arg2: i32) -> (i32, i32) {
    %c0_i32 = arith.constant 0 : i32
    %c0_i32_0 = arith.constant 0 : i32
    return %c0_i32, %arg1 : i32, i32
  }
  func.func @transform_3(%arg0: i32, %arg1: i32, %arg2: i32) -> (i32, i32) {
    %c0_i32 = arith.constant 0 : i32
    return %arg0, %arg1 : i32, i32
  }
}

</mosaic_0001>

<bundles_post_ra>
// kernel: tpu_custom_call.1
= control target key start
LH: loop header
LB: loop body
LE: loop exit
PB: predicated region body
PF: predicated region fallthrough
CT: control target
= control target key end

     0   :  { %8 = vsyncpa [#allocation4], 0  ;;  %s465_s0 = inlined_call_operand.hbm [shape: f32[32,128], index: 0, kind: input, shape index: {}]   ;;  %s466_s1 = inlined_call_operand.hbm [shape: f32[128,128], index: 1, kind: input, shape index: {}]   ;;  %s467_s2 = inlined_call_operand.vmem [shape: f32[1,128], index: 2, kind: input, shape index: {}]   ;;  %s468_s3 = inlined_call_operand.hbm [shape: f32[32,128], index: 3, kind: output, shape index: {}]  }
   0x1   :  { %9 = vsyncpa [#allocation7], 0 }
   0x2   :  { %10 = vsyncpa [#allocation5], 0  ;;  %s392_s12 = smov [#allocation3]   ;;  %s320_s16 = scalar_lea.hbm %s465_s0, 512 }
   0x3   :  { %s16_s13 = sshll.u32 %s392_s12, 4  ;;  %p321_p0 = scmp.ne.s32.totalorder %s465_s0, %s320_s16  ;;  %s17_s13 = int_to_ptr.vmem [resolvable:$true] %s16_s13 }
   0x4   :  { %p324_p1 = scmp.lt.u32.totalorder %s320_s16, %s465_s0 }
   0x6   :  { %p326_p2 = pnand %p324_p1, %p321_p0 }
   0x8   :  { %329 = shalt.err (!%p326_p2)
}
   0x9   :  { %s330_s21 = scalar_lea.vmem %s17_s13, 512  ;;  %p335_p4 = scmp.lt.s32.totalorder %s17_s13, %s17_s13 }
   0xa   :  { %p331_p3 = scmp.ne.s32.totalorder %s17_s13, %s330_s21  ;;  %p336_p5 = scmp.lt.s32.totalorder %s330_s21, %s330_s21 }
   0xc   :  { %p337_p6 = por %p336_p5, %p335_p4 }
   0xe   :  { %p338_p7 = pnand %p337_p6, %p331_p3 }
  0x10   :  { %341 = shalt.err (!%p338_p7)
}
  0x11   :  { %s393_s22 = smov 128   ;;  %s394_s23 = smov 8  }
  0x12   :  { %22 = dma.hbm_to_vmem [thread:$0]  %s465_s0, 512, %s17_s13, [#allocation4], %s393_s22, %s393_s22, %s394_s23  }
  0x13   :  { %s395_s26 = smov [#allocation6]   ;;  %s342_s30 = scalar_lea.hbm %s466_s1, 2048 }
  0x14   :  { %s28_s27 = sshll.u32 %s395_s26, 4  ;;  %p343_p8 = scmp.ne.s32.totalorder %s466_s1, %s342_s30  ;;  %s29_s27 = int_to_ptr.vmem [resolvable:$true] %s28_s27 }
  0x15   :  { %p346_p9 = scmp.lt.u32.totalorder %s342_s30, %s466_s1 }
  0x17   :  { %p348_p10 = pnand %p346_p9, %p343_p8 }
  0x19   :  { %351 = shalt.err (!%p348_p10)
}
  0x1a   :  { %s352_s8 = scalar_lea.vmem %s29_s27, 2048  ;;  %p357_p12 = scmp.lt.s32.totalorder %s29_s27, %s29_s27 }
  0x1b   :  { %p353_p11 = scmp.ne.s32.totalorder %s29_s27, %s352_s8  ;;  %p358_p13 = scmp.lt.s32.totalorder %s352_s8, %s352_s8 }
  0x1d   :  { %p359_p0 = por %p358_p13, %p357_p12 }
  0x1f   :  { %p360_p1 = pnand %p359_p0, %p353_p11 }
  0x21   :  { %363 = shalt.err (!%p360_p1)
}
  0x22   :  { %34 = dma.hbm_to_vmem [thread:$0]  %s466_s1, 2048, %s29_s27, [#allocation7], %s393_s22, %s393_s22, %s394_s23  }
  0x23   :  { %386 = dma.done.wait [#allocation4], 512  }
  0x24   :  { %387 = vsyncadd [#allocation4], 4294966784 }
  0x25   :  { %388 = dma.done.wait [#allocation7], 2048  }
  0x26   :  { %389 = vsyncadd [#allocation7], 4294965248  ;;  %v59_v0 = vld [vmem:[#allocation6] sm:$0xff]  ;;  %v60_v1 = vld [vmem:[#allocation6 + $0x8] sm:$0xff]  ;;  %s396_s11 = smov [#allocation8]  }
  0x27   :  { %v61_v2 = vld [vmem:[#allocation6 + $0x10] sm:$0xff]  ;;  %v267_v3 = vpack.c.bf16 %v60_v1, %v59_v0  ;;  %v62_v4 = vld [vmem:[#allocation6 + $0x18] sm:$0xff]  ;;  %v63_v6 = vld [vmem:[#allocation6 + $0x20] sm:$0xff]  ;;  %s195_s12 = sshll.u32 %s396_s11, 4  ;;  %s196_s12 = int_to_ptr.vmem [resolvable:$true] %s195_s12 }
  0x28   :  { %v271_v5 = vpack.c.bf16 %v62_v4, %v61_v2  ;;  %v64_v7 = vld [vmem:[#allocation6 + $0x28] sm:$0xff]  ;;  %v55_v9 = vld [vmem:[#allocation3] sm:$0xff]  ;;  %v57_v10 = vld [vmem:[#allocation3 + $0x10] sm:$0xff]  ;;  %s364_s13 = scalar_lea.vmem %s196_s12, 512  ;;  %p369_p3 = scmp.lt.s32.totalorder %s196_s12, %s196_s12 }
  0x29   :  { %268 = vmatprep.subr.bf16.mxu0 %v267_v3  ;;  %299 = vmatprep.subr.bf16.mxu1 %v267_v3  ;;  %v275_v8 = vpack.c.bf16 %v64_v7, %v63_v6  ;;  %v65_v11 = vld [vmem:[#allocation6 + $0x30] sm:$0xff]  ;;  %v66_v12 = vld [vmem:[#allocation6 + $0x38] sm:$0xff]  ;;  %v67_v14 = vld [vmem:[#allocation6 + $0x40] sm:$0xff]  ;;  %p365_p2 = scmp.ne.s32.totalorder %s196_s12, %s364_s13  ;;  %p370_p4 = scmp.lt.s32.totalorder %s364_s13, %s364_s13 }
  0x2a   :  { %270 = vmatpush3.bf16.msra.mxu0 %v267_v3  ;;  %307 = vmatpush3.bf16.msra.mxu1 %v267_v3  ;;  %v279_v13 = vpack.c.bf16 %v66_v12, %v65_v11  ;;  %v68_v15 = vld [vmem:[#allocation6 + $0x48] sm:$0xff]  ;;  %v69_v17 = vld [vmem:[#allocation6 + $0x50] sm:$0xff]  ;;  %v70_v18 = vld [vmem:[#allocation6 + $0x58] sm:$0xff] }
  0x2b   :  { %272 = vmatprep.subr.bf16.mxu0 %v271_v5  ;;  %300 = vmatprep.subr.bf16.mxu1 %v271_v5  ;;  %v283_v16 = vpack.c.bf16 %v68_v15, %v67_v14  ;;  %v287_v19 = vpack.c.bf16 %v70_v18, %v69_v17  ;;  %v71_v20 = vld [vmem:[#allocation6 + $0x60] sm:$0xff]  ;;  %v72_v21 = vld [vmem:[#allocation6 + $0x68] sm:$0xff]  ;;  %v73_v23 = vld [vmem:[#allocation6 + $0x70] sm:$0xff]  ;;  %p371_p5 = por %p370_p4, %p369_p3 }
  0x2c   :  { %261 = vmatprep.mubr.f32.mxu0 %v55_v9  ;;  %264 = vmatprep.mubr.f32.mxu1 %v57_v10  ;;  %v291_v22 = vpack.c.bf16 %v72_v21, %v71_v20  ;;  %v74_v24 = vld [vmem:[#allocation6 + $0x78] sm:$0xff]  ;;  %v56_v26 = vld [vmem:[#allocation3 + $0x8] sm:$0xff]  ;;  %v208_v28 = vld [vmem:[%s467_s2] ss:$0 sm:$0xff] }
  0x2d   :  { %v295_v25 = vpack.c.bf16 %v74_v24, %v73_v23  ;;  %v58_v27 = vld [vmem:[#allocation3 + $0x18] sm:$0xff]  ;;  %p372_p6 = pnand %p371_p5, %p365_p2 }
  0x2e   :  { %274 = vmatpush3.bf16.msra.mxu0 %v271_v5  ;;  %308 = vmatpush3.bf16.msra.mxu1 %v271_v5 }
  0x2f   :  { %276 = vmatprep.subr.bf16.mxu0 %v275_v8  ;;  %301 = vmatprep.subr.bf16.mxu1 %v275_v8 }
  0x32   :  { %278 = vmatpush3.bf16.msra.mxu0 %v275_v8  ;;  %309 = vmatpush3.bf16.msra.mxu1 %v275_v8 }
  0x33   :  { %280 = vmatprep.subr.bf16.mxu0 %v279_v13  ;;  %302 = vmatprep.subr.bf16.mxu1 %v279_v13 }
  0x36   :  { %282 = vmatpush3.bf16.msra.mxu0 %v279_v13  ;;  %310 = vmatpush3.bf16.msra.mxu1 %v279_v13 }
  0x37   :  { %284 = vmatprep.subr.bf16.mxu0 %v283_v16  ;;  %303 = vmatprep.subr.bf16.mxu1 %v283_v16 }
  0x3a   :  { %286 = vmatpush3.bf16.msra.mxu0 %v283_v16  ;;  %311 = vmatpush3.bf16.msra.mxu1 %v283_v16 }
  0x3b   :  { %288 = vmatprep.subr.bf16.mxu0 %v287_v19  ;;  %304 = vmatprep.subr.bf16.mxu1 %v287_v19 }
  0x3e   :  { %290 = vmatpush3.bf16.msra.mxu0 %v287_v19  ;;  %312 = vmatpush3.bf16.msra.mxu1 %v287_v19 }
  0x3f   :  { %292 = vmatprep.subr.bf16.mxu0 %v291_v22  ;;  %305 = vmatprep.subr.bf16.mxu1 %v291_v22 }
  0x42   :  { %294 = vmatpush3.bf16.msra.mxu0 %v291_v22  ;;  %313 = vmatpush3.bf16.msra.mxu1 %v291_v22 }
  0x43   :  { %296 = vmatprep.subr.bf16.mxu0 %v295_v25  ;;  %306 = vmatprep.subr.bf16.mxu1 %v295_v25 }
  0x46   :  { %298 = vmatpush3.bf16.msra.mxu0 %v295_v25  ;;  %314 = vmatpush3.bf16.msra.mxu1 %v295_v25 }
  0x49   :  { %262 = vmatmul.mubr.f32.vlgmr.msra.gmra.mrb[0].mxu0 %v56_v26  ;;  %265 = vmatmul.mubr.f32.vlgmr.msra.gmra.mrb[0].mxu1 %v58_v27 }
 0x11c   :  { %v263_v29 = vpop.f32.mrb[0].mxu0  ;;  %v266_v30 = vpop.f32.mrb[0].mxu1 }
 0x11d   :  { %v183_v31 = vadd.f32 %v263_v29, %v208_v28  ;;  %v185_v32 = vadd.f32 %v266_v30, %v208_v28  ;;  %v141_v33 = vpop.f32.mrb[1].mxu0  ;;  %v151_v34 = vpop.f32.mrb[1].mxu1 }
 0x11e   :  { %v182_v35 = vadd.f32 %v208_v28, %v141_v33  ;;  %v184_v36 = vadd.f32 %v208_v28, %v151_v34 }
 0x11f   :  { %187 = vst [vmem:[#allocation8 + $0x8] sm:$0xff] %v183_v31  ;;  %189 = vst [vmem:[#allocation8 + $0x18] sm:$0xff] %v185_v32 }
 0x120   :  { %186 = vst [vmem:[#allocation8] sm:$0xff] %v182_v35  ;;  %188 = vst [vmem:[#allocation8 + $0x10] sm:$0xff] %v184_v36 }
 0x121   :  { %375 = shalt.err (!%p372_p6)
}
 0x122   :  { %s376_s15 = scalar_lea.hbm %s468_s3, 512 }
 0x123   :  { %p377_p7 = scmp.ne.s32.totalorder %s468_s3, %s376_s15  ;;  %p380_p8 = scmp.lt.u32.totalorder %s376_s15, %s468_s3 }
 0x125   :  { %p382_p9 = pnand %p380_p8, %p377_p7 }
 0x127   :  { %385 = shalt.err (!%p382_p9)
}
 0x128   :  { %201 = dma.vmem_to_hbm [thread:$0]  %s196_s12, 512, %s468_s3, [#allocation5], %s393_s22, %s393_s22, %s394_s23  }
 0x129   :  { %390 = dma.done.wait [#allocation5], 512  }
 0x12a   :  { %391 = vsyncadd [#allocation5], 4294966784 }
 0x12b   :  { %205 = vsyncpa [#allocation4], 1 }
 0x12c   :  { %206 = vsyncpa [#allocation7], 1 }
 0x12d   :  { %207 = vsyncpa [#allocation5], 1 }

</bundles_post_ra>
